<compile_context>
chip_gen: v7x
topology: tpu7x:2x2x1
jax: 0.10.0
libtpu: 0.0.40
codegen_flags: <defaults>
</compile_context>

<pallas_src>
import functools

import jax
import jax.numpy as jnp
from jax.experimental import pallas as pl
from jax.experimental.pallas import tpu as pltpu

HIDDEN = 40
HIDDEN_LAYERS = 3  # number of extra Linear(40,40)+Tanh blocks
N_LAYERS = HIDDEN_LAYERS + 2  # 5 Linear layers total


def _round_up(x, m):
    return (x + m - 1) // m * m


def _odefunc_kernel(y_ref, w_ref, b_ref, o_ref):
    """One batch tile: h = (S, TB) feature-major activations.

    y_ref: (S, TB)    zero-padded, feature-major input tile
    w_ref: (L, S, S)  packed, zero-padded weights (PyTorch (out, in) layout)
    b_ref: (L, S, 1)  packed, zero-padded biases
    o_ref: (S, TB)    feature-major output tile (rows >= D are don't-care)
    """
    n_layers = w_ref.shape[0]
    h = y_ref[...]  # (S, TB), f32

    # Unrolled chain of 5 small matmuls (MXU) + 4 tanh (EUP).
    for i in range(n_layers - 1):
        h = jnp.tanh(
            jnp.dot(w_ref[i], h, preferred_element_type=jnp.float32) + b_ref[i]
        )
    out = jnp.dot(w_ref[n_layers - 1], h, preferred_element_type=jnp.float32)
    out = out + b_ref[n_layers - 1]

    o_ref[...] = out.astype(o_ref.dtype)


def pack_params(params):
    """Pack list of PyTorch-layout (W:(out,in), b:(out,)) into two padded slabs.

    Returns (w_slab:(L,S,S), b_slab:(L,S,1)) with S = round_up(max dim, 8).
    Zero-padding keeps the math exact: padded contraction entries contribute 0.
    """
    dims = []
    for w, _ in params:
        dims.extend(w.shape)
    S = _round_up(max(dims), 8)
    L = len(params)

    w_slab = jnp.zeros((L, S, S), jnp.float32)
    b_slab = jnp.zeros((L, S, 1), jnp.float32)
    for i, (w, b) in enumerate(params):
        o, k = w.shape
        w_slab = w_slab.at[i, :o, :k].set(w.astype(jnp.float32))
        b_slab = b_slab.at[i, :o, 0].set(b.astype(jnp.float32))
    return w_slab, b_slab


def odefunc_forward(t, y, w_slab, b_slab):
    """Pallas equivalent of ODEFunc.forward(t, y). `t` is ignored (as in the ref)."""
    del t
    B, D = y.shape
    L, S, _ = w_slab.shape

    # Batch tile: lane-dense (multiple of 128), bigger tiles for bigger batches.
    tb = _round_up(min(max(B, 1), 512), 128)
    B_pad = _round_up(B, tb)
    grid = (B_pad // tb,)

    # Feature-major, zero-padded input: (S, B_pad).
    yT = jnp.zeros((S, B_pad), jnp.float32).at[:D, :B].set(y.T.astype(jnp.float32))

    flops = 2 * L * S * S * B_pad
    transcendentals = (L - 1) * S * B_pad
    bytes_accessed = 4 * (2 * S * B_pad + L * S * S + L * S)

    out_T = pl.pallas_call(
        _odefunc_kernel,
        out_shape=jax.ShapeDtypeStruct((S, B_pad), jnp.float32),
        grid=grid,
        in_specs=[
            pl.BlockSpec((S, tb), lambda i: (0, i)),          # y tile (pipelined)
            pl.BlockSpec((L, S, S), lambda i: (0, 0, 0)),     # weights: resident
            pl.BlockSpec((L, S, 1), lambda i: (0, 0, 0)),     # biases:  resident
        ],
        out_specs=pl.BlockSpec((S, tb), lambda i: (0, i)),
        compiler_params=pltpu.CompilerParams(
            dimension_semantics=("parallel",),
        ),
        cost_estimate=pl.CostEstimate(
            flops=flops,
            transcendentals=transcendentals,
            bytes_accessed=bytes_accessed,
        ),
    )(yT, w_slab, b_slab)

    return out_T[:D, :B].T


def init_params(key, input_size, hidden_size=HIDDEN, hidden_layers=HIDDEN_LAYERS):
    """Deterministic synthetic parameters (PyTorch nn.Linear-like uniform init).

    Returns list of (W, b) in PyTorch layout: W (out, in), b (out,).
    """
    sizes = [(hidden_size, input_size)]
    sizes += [(hidden_size, hidden_size)] * hidden_layers
    sizes += [(input_size, hidden_size)]

    params = []
    for (fan_out, fan_in) in sizes:
        key, kw, kb = jax.random.split(key, 3)
        bound = 1.0 / jnp.sqrt(jnp.float32(fan_in))
        w = jax.random.uniform(kw, (fan_out, fan_in), jnp.float32, -bound, bound)
        b = jax.random.uniform(kb, (fan_out,), jnp.float32, -bound, bound)
        params.append((w, b))
    return params


def odefunc_reference(t, y, params):
    """Plain-JAX reference (PyTorch semantics) for correctness checking."""
    del t
    h = y
    n = len(params)
    for i, (w, b) in enumerate(params):
        h = h @ w.T + b
        if i < n - 1:
            h = jnp.tanh(h)
    return h


if __name__ == "__main__":
    key = jax.random.PRNGKey(0)
    key, ky = jax.random.split(key)

    # layer_len (input/output size) and a small batch of states y.
    layer_len = 8
    batch = 8
    y = jax.random.normal(ky, (batch, layer_len), jnp.float32)
    t = jnp.float32(0.0)  # unused, kept for API parity with ODEFunc.forward(t, y)

    params = init_params(key, layer_len)
    w_slab, b_slab = pack_params(params)

    fwd = jax.jit(odefunc_forward)
    out = fwd(t, y, w_slab, b_slab)
    out = jax.block_until_ready(out)

    ref = odefunc_reference(t, y, params)
    assert out.shape == (batch, layer_len)
    assert jnp.allclose(out, ref, atol=1e-5, rtol=1e-5), "mismatch vs JAX reference"

    print("KERNEL_OK")
</pallas_src>

<mosaic_0001>
module attributes {stable_mosaic.version = 11 : i64} {
  func.func @_odefunc_kernel(%arg0: i32, %arg1: memref<40x128xf32, #tpu.memory_space<vmem>>, %arg2: memref<5x40x40xf32, #tpu.memory_space<vmem>>, %arg3: memref<5x40x1xf32, #tpu.memory_space<vmem>>, %arg4: memref<40x128xf32, #tpu.memory_space<vmem>>) attributes {dimension_semantics = [#tpu.dimension_semantics<parallel>], iteration_bounds = array<i64: 1>, scalar_prefetch = 0 : i64, scratch_operands = 0 : i64, tpu.core_type = #tpu.core_type<tc>, window_params = [{transform_indices = @transform_0, window_bounds = array<i64: 40, 128>}, {pipeline_mode = #tpu.pipeline_mode<synchronous>, transform_indices = @transform_1, window_bounds = array<i64: 5, 40, 40>}, {pipeline_mode = #tpu.pipeline_mode<synchronous>, transform_indices = @transform_2, window_bounds = array<i64: 5, 40, 1>}, {transform_indices = @transform_3, window_bounds = array<i64: 40, 128>}]} {
    %c0 = arith.constant 0 : index
    %c0_0 = arith.constant 0 : index
    %0 = vector.load %arg1[%c0, %c0_0] : memref<40x128xf32, #tpu.memory_space<vmem>>, vector<40x128xf32>
    %c0_1 = arith.constant 0 : index
    %c0_2 = arith.constant 0 : index
    %c0_3 = arith.constant 0 : index
    %1 = vector.load %arg2[%c0_1, %c0_2, %c0_3] : memref<5x40x40xf32, #tpu.memory_space<vmem>>, vector<1x40x40xf32>
    %2 = vector.shape_cast %1 : vector<1x40x40xf32> to vector<40x40xf32>
    %cst = arith.constant dense<0.000000e+00> : vector<40x128xf32>
    %3 = tpu.matmul %2, %0, %cst {dimension_numbers = #tpu.dot_dimension_numbers<[1], [0], [0], [1], [0, 0, 1, 1], [], []>} : vector<40x40xf32>, vector<40x128xf32>, vector<40x128xf32> -> vector<40x128xf32>
    %c0_4 = arith.constant 0 : index
    %c0_5 = arith.constant 0 : index
    %c0_6 = arith.constant 0 : index
    %4 = vector.load %arg3[%c0_4, %c0_5, %c0_6] : memref<5x40x1xf32, #tpu.memory_space<vmem>>, vector<1x40x1xf32>
    %5 = vector.shape_cast %4 : vector<1x40x1xf32> to vector<40x1xf32>
    %6 = vector.broadcast %5 : vector<40x1xf32> to vector<40x128xf32>
    %7 = arith.addf %3, %6 : vector<40x128xf32>
    %8 = math.tanh %7 : vector<40x128xf32>
    %c1 = arith.constant 1 : index
    %c0_7 = arith.constant 0 : index
    %c0_8 = arith.constant 0 : index
    %9 = vector.load %arg2[%c1, %c0_7, %c0_8] : memref<5x40x40xf32, #tpu.memory_space<vmem>>, vector<1x40x40xf32>
    %10 = vector.shape_cast %9 : vector<1x40x40xf32> to vector<40x40xf32>
    %cst_9 = arith.constant dense<0.000000e+00> : vector<40x128xf32>
    %11 = tpu.matmul %10, %8, %cst_9 {dimension_numbers = #tpu.dot_dimension_numbers<[1], [0], [0], [1], [0, 0, 1, 1], [], []>} : vector<40x40xf32>, vector<40x128xf32>, vector<40x128xf32> -> vector<40x128xf32>
    %c1_10 = arith.constant 1 : index
    %c0_11 = arith.constant 0 : index
    %c0_12 = arith.constant 0 : index
    %12 = vector.load %arg3[%c1_10, %c0_11, %c0_12] : memref<5x40x1xf32, #tpu.memory_space<vmem>>, vector<1x40x1xf32>
    %13 = vector.shape_cast %12 : vector<1x40x1xf32> to vector<40x1xf32>
    %14 = vector.broadcast %13 : vector<40x1xf32> to vector<40x128xf32>
    %15 = arith.addf %11, %14 : vector<40x128xf32>
    %16 = math.tanh %15 : vector<40x128xf32>
    %c2 = arith.constant 2 : index
    %c0_13 = arith.constant 0 : index
    %c0_14 = arith.constant 0 : index
    %17 = vector.load %arg2[%c2, %c0_13, %c0_14] : memref<5x40x40xf32, #tpu.memory_space<vmem>>, vector<1x40x40xf32>
    %18 = vector.shape_cast %17 : vector<1x40x40xf32> to vector<40x40xf32>
    %cst_15 = arith.constant dense<0.000000e+00> : vector<40x128xf32>
    %19 = tpu.matmul %18, %16, %cst_15 {dimension_numbers = #tpu.dot_dimension_numbers<[1], [0], [0], [1], [0, 0, 1, 1], [], []>} : vector<40x40xf32>, vector<40x128xf32>, vector<40x128xf32> -> vector<40x128xf32>
    %c2_16 = arith.constant 2 : index
    %c0_17 = arith.constant 0 : index
    %c0_18 = arith.constant 0 : index
    %20 = vector.load %arg3[%c2_16, %c0_17, %c0_18] : memref<5x40x1xf32, #tpu.memory_space<vmem>>, vector<1x40x1xf32>
    %21 = vector.shape_cast %20 : vector<1x40x1xf32> to vector<40x1xf32>
    %22 = vector.broadcast %21 : vector<40x1xf32> to vector<40x128xf32>
    %23 = arith.addf %19, %22 : vector<40x128xf32>
    %24 = math.tanh %23 : vector<40x128xf32>
    %c3 = arith.constant 3 : index
    %c0_19 = arith.constant 0 : index
    %c0_20 = arith.constant 0 : index
    %25 = vector.load %arg2[%c3, %c0_19, %c0_20] : memref<5x40x40xf32, #tpu.memory_space<vmem>>, vector<1x40x40xf32>
    %26 = vector.shape_cast %25 : vector<1x40x40xf32> to vector<40x40xf32>
    %cst_21 = arith.constant dense<0.000000e+00> : vector<40x128xf32>
    %27 = tpu.matmul %26, %24, %cst_21 {dimension_numbers = #tpu.dot_dimension_numbers<[1], [0], [0], [1], [0, 0, 1, 1], [], []>} : vector<40x40xf32>, vector<40x128xf32>, vector<40x128xf32> -> vector<40x128xf32>
    %c3_22 = arith.constant 3 : index
    %c0_23 = arith.constant 0 : index
    %c0_24 = arith.constant 0 : index
    %28 = vector.load %arg3[%c3_22, %c0_23, %c0_24] : memref<5x40x1xf32, #tpu.memory_space<vmem>>, vector<1x40x1xf32>
    %29 = vector.shape_cast %28 : vector<1x40x1xf32> to vector<40x1xf32>
    %30 = vector.broadcast %29 : vector<40x1xf32> to vector<40x128xf32>
    %31 = arith.addf %27, %30 : vector<40x128xf32>
    %32 = math.tanh %31 : vector<40x128xf32>
    %c4 = arith.constant 4 : index
    %c0_25 = arith.constant 0 : index
    %c0_26 = arith.constant 0 : index
    %33 = vector.load %arg2[%c4, %c0_25, %c0_26] : memref<5x40x40xf32, #tpu.memory_space<vmem>>, vector<1x40x40xf32>
    %34 = vector.shape_cast %33 : vector<1x40x40xf32> to vector<40x40xf32>
    %cst_27 = arith.constant dense<0.000000e+00> : vector<40x128xf32>
    %35 = tpu.matmul %34, %32, %cst_27 {dimension_numbers = #tpu.dot_dimension_numbers<[1], [0], [0], [1], [0, 0, 1, 1], [], []>} : vector<40x40xf32>, vector<40x128xf32>, vector<40x128xf32> -> vector<40x128xf32>
    %c4_28 = arith.constant 4 : index
    %c0_29 = arith.constant 0 : index
    %c0_30 = arith.constant 0 : index
    %36 = vector.load %arg3[%c4_28, %c0_29, %c0_30] : memref<5x40x1xf32, #tpu.memory_space<vmem>>, vector<1x40x1xf32>
    %37 = vector.shape_cast %36 : vector<1x40x1xf32> to vector<40x1xf32>
    %38 = vector.broadcast %37 : vector<40x1xf32> to vector<40x128xf32>
    %39 = arith.addf %35, %38 : vector<40x128xf32>
    %c0_31 = arith.constant 0 : index
    %c0_32 = arith.constant 0 : index
    %40 = vector.load %arg4[%c0_31, %c0_32] : memref<40x128xf32, #tpu.memory_space<vmem>>, vector<40x128xf32>
    tpu.vector_store %arg4[%c0_31, %c0_32], %39 {strides = array<i32>} : memref<40x128xf32, #tpu.memory_space<vmem>>, vector<40x128xf32>,
    return
  }
  func.func @transform_0(%arg0: i32) -> (i32, i32) {
    %c0_i32 = arith.constant 0 : i32
    %c0_i32_0 = arith.constant 0 : i32
    return %c0_i32, %arg0 : i32, i32
  }
  func.func @transform_1(%arg0: i32) -> (i32, i32, i32) {
    %c0_i32 = arith.constant 0 : i32
    %c0_i32_0 = arith.constant 0 : i32
    %c0_i32_1 = arith.constant 0 : i32
    %c0_i32_2 = arith.constant 0 : i32
    return %c0_i32, %c0_i32_0, %c0_i32_1 : i32, i32, i32
  }
  func.func @transform_2(%arg0: i32) -> (i32, i32, i32) {
    %c0_i32 = arith.constant 0 : i32
    %c0_i32_0 = arith.constant 0 : i32
    %c0_i32_1 = arith.constant 0 : i32
    %c0_i32_2 = arith.constant 0 : i32
    return %c0_i32, %c0_i32_0, %c0_i32_1 : i32, i32, i32
  }
  func.func @transform_3(%arg0: i32) -> (i32, i32) {
    %c0_i32 = arith.constant 0 : i32
    %c0_i32_0 = arith.constant 0 : i32
    return %c0_i32, %arg0 : i32, i32
  }
}

</mosaic_0001>

<bundles_post_ra>
// kernel: odefunc_forward.1
= control target key start
LH: loop header
LB: loop body
LE: loop exit
PB: predicated region body
PF: predicated region fallthrough
CT: control target
= control target key end

     0   :  { %v1079_v0 = vmov 0.0|0.0   ;;  %vm1080_vm0 = vmmov 0   ;;  %v1081_v6 = vmov 0.0   ;;  %v1082_v7 = vmov 0   ;;  %s1376_s0 = inlined_call_operand.vmem [shape: f32[40,128], index: 0, kind: input, shape index: {}]   ;;  %s1377_s2 = inlined_call_operand.vmem [shape: f32[5,40,1], index: 2, kind: input, shape index: {}]   ;;  %s1378_s1 = inlined_call_operand.vmem [shape: f32[5,40,40], index: 1, kind: input, shape index: {}]   ;;  %s1379_s3 = inlined_call_operand.vmem [shape: f32[40,128], index: 3, kind: output, shape index: {}]  }
   0x1   :  { %997 = vmatprep.subr.bf16.mxu0 %v1079_v0  ;;  %1027 = vmatprep.subr.bf16.mxu1 %v1079_v0  ;;  %v14_v1 = vld [vmem:[%s1376_s0] sm:$0xff]  ;;  %v15_v2 = vld [vmem:[%s1376_s0 + $0x8] sm:$0xff]  ;;  %v16_v3 = vld [vmem:[%s1376_s0 + $0x10] sm:$0xff]  ;;  %vm54_vm1 = vcmask 326656  }
   0x2   :  { %v998_v4 = vpack.c.bf16 %v15_v2, %v14_v1  ;;  %v17_v5 = vld [vmem:[%s1376_s0 + $0x18] sm:$0xff]  ;;  %882 = vmatprep.mubr.msk.f32.mxu0 %vm1080_vm0, %v1081_v6  ;;  %891 = vmatprep.mubr.msk.f32.mxu1 %vm1080_vm0, %v1081_v6  ;;  %v24_v9 = vld [vmem:[%s1377_s2] sm:$0xff]  ;;  %v26_v10 = vld [vmem:[%s1377_s2 + $0x10] sm:$0xff] }
   0x3   :  { %1037 = vset.pattern.permute.xlu0 %v1082_v7  ;;  %1038 = vset.pattern.permute.xlu1 %v1082_v7  ;;  %v1001_v8 = vpack.c.bf16 %v17_v5, %v16_v3  ;;  %v25_v11 = vld [vmem:[%s1377_s2 + $0x8] sm:$0xff]  ;;  %v27_v12 = vld [vmem:[%s1377_s2 + $0x18] sm:$0xff]  ;;  %v18_v13 = vld [vmem:[%s1376_s0 + $0x20] sm:$0xff] }
   0x4   :  { %999 = vmatpush3.bf16.msra.mxu0 %v998_v4  ;;  %1030 = vmatpush3.bf16.msra.mxu1 %v998_v4  ;;  %v19_v14 = vld [vmem:[%s1378_s1] sm:$0xff]  ;;  %v22_v15 = vld [vmem:[%s1378_s1 + $0x18] sm:$0xff]  ;;  %v767_v17 = vld [vmem:[%s1377_s2 + $0x28] sm:$0xff] }
   0x5   :  { %1000 = vmatprep.subr.bf16.mxu0 %v1079_v0  ;;  %1028 = vmatprep.subr.bf16.mxu1 %v1079_v0  ;;  %v28_v16 = vld [vmem:[%s1377_s2 + $0x20] sm:$0xff]  ;;  %v20_v18 = vld [vmem:[%s1378_s1 + $0x8] sm:$0xff]  ;;  %v768_v20 = vld [vmem:[%s1377_s2 + $0x30] sm:$0xff] }
   0x6   :  { %31 = vperm.xlu0 %1037, %v24_v9   ;;  %41 = vperm.xlu1 %1038, %v26_v10   ;;  %v23_v19 = vld [vmem:[%s1378_s1 + $0x20] sm:$0xff]  ;;  %v769_v21 = vld [vmem:[%s1377_s2 + $0x38] sm:$0xff]  ;;  %v21_v22 = vld [vmem:[%s1378_s1 + $0x10] sm:$0xff] }
   0x7   :  { %v770_v23 = vld [vmem:[%s1377_s2 + $0x40] sm:$0xff]  ;;  %v771_v24 = vld [vmem:[%s1377_s2 + $0x48] sm:$0xff]  ;;  %v782_v25 = vld [vmem:[%s1377_s2 + $0x50] sm:$0xff] }
   0x8   :  { %1002 = vmatpush3.bf16.msra.mxu0 %v1001_v8  ;;  %1031 = vmatpush3.bf16.msra.mxu1 %v1001_v8  ;;  %v783_v26 = vld [vmem:[%s1377_s2 + $0x58] sm:$0xff]  ;;  %v784_v27 = vld [vmem:[%s1377_s2 + $0x60] sm:$0xff]  ;;  %v785_v28 = vld [vmem:[%s1377_s2 + $0x68] sm:$0xff] }
   0x9   :  { %880 = vmatprep.subr.mxu0 %v1081_v6  ;;  %1029 = vmatprep.subr.mxu1 %v1081_v6  ;;  %v786_v29 = vld [vmem:[%s1377_s2 + $0x70] sm:$0xff]  ;;  %v797_v30 = vld [vmem:[%s1377_s2 + $0x78] sm:$0xff]  ;;  %v798_v31 = vld [vmem:[%s1377_s2 + $0x80] sm:$0xff] }
   0xa   :  { %36 = vperm.xlu0 %1037, %v25_v11   ;;  %46 = vperm.xlu1 %1038, %v27_v12   ;;  %v799_v32 = vld [vmem:[%s1377_s2 + $0x88] sm:$0xff]  ;;  %v800_v33 = vld [vmem:[%s1377_s2 + $0x90] sm:$0xff]  ;;  %v801_v34 = vld [vmem:[%s1377_s2 + $0x98] sm:$0xff] }
   0xb   :  { %v812_v35 = vld [vmem:[%s1377_s2 + $0xa0] sm:$0xff]  ;;  %v813_v36 = vld [vmem:[%s1377_s2 + $0xa8] sm:$0xff]  ;;  %v814_v37 = vld [vmem:[%s1377_s2 + $0xb0] sm:$0xff] }
   0xc   :  { %881 = vmatpush3.msra.mxu0 %v18_v13  ;;  %1032 = vmatpush3.msra.mxu1 %v18_v13  ;;  %v815_v38 = vld [vmem:[%s1377_s2 + $0xb8] sm:$0xff]  ;;  %v816_v39 = vld [vmem:[%s1377_s2 + $0xc0] sm:$0xff]  ;;  %v762_v3 = vld [vmem:[%s1378_s1 + $0x28] sm:$0xff] }
   0xd   :  { %883 = vmatmul.mubr.msk.f32.vlgmr.msra.gmra.mrb[0].mxu0 %vm54_vm1, %v19_v14  ;;  %892 = vmatmul.mubr.msk.f32.vlgmr.msra.gmra.mrb[0].mxu1 %vm54_vm1, %v22_v15  ;;  %v763_v5 = vld [vmem:[%s1378_s1 + $0x30] sm:$0xff]  ;;  %v764_v7 = vld [vmem:[%s1378_s1 + $0x38] sm:$0xff]  ;;  %v765_v8 = vld [vmem:[%s1378_s1 + $0x40] sm:$0xff] }
   0xe   :  { %885 = vmatprep.mubr.msk.f32.mxu0 %vm1080_vm0, %v1081_v6  ;;  %894 = vmatprep.mubr.msk.f32.mxu1 %vm1080_vm0, %v1081_v6  ;;  %v766_v9 = vld [vmem:[%s1378_s1 + $0x48] sm:$0xff] }
   0xf   :  { %51 = vperm.xlu0 %1037, %v28_v16   ;;  %179 = vperm.xlu1 %1038, %v767_v17  }
  0x10   :  { %1003 = vmatprep.subr.bf16.mxu1 %v1079_v0  ;;  %1009 = vmatprep.subr.bf16.mxu0 %v1079_v0 }
  0x11   :  { %886 = vmatmul.mubr.msk.f32.gmra.mrb[2].mxu0 %vm54_vm1, %v20_v18  ;;  %895 = vmatmul.mubr.msk.f32.gmra.mrb[2].mxu1 %vm54_vm1, %v23_v19 }
  0x12   :  { %888 = vmatprep.mubr.msk.f32.mxu0 %vm1080_vm0, %v1081_v6  ;;  %907 = vmatprep.mubr.msk.f32.mxu1 %vm1080_vm0, %v1081_v6 }
  0x13   :  { %184 = vperm.xlu0 %1037, %v768_v20   ;;  %189 = vperm.xlu1 %1038, %v769_v21  }
  0x15   :  { %889 = vmatmul.mubr.msk.f32.gmra.mrb[4].mxu0 %vm54_vm1, %v21_v22 }
  0x16   :  { %932 = vmatprep.mubr.msk.f32.mxu0 %vm1080_vm0, %v1081_v6 }
  0x17   :  { %194 = vperm.xlu0 %1037, %v770_v23   ;;  %199 = vperm.xlu1 %1038, %v771_v24  }
  0x1b   :  { %326 = vperm.xlu0 %1037, %v782_v25   ;;  %331 = vperm.xlu1 %1038, %v783_v26  }
  0x1f   :  { %336 = vperm.xlu0 %1037, %v784_v27   ;;  %341 = vperm.xlu1 %1038, %v785_v28  }
  0x23   :  { %346 = vperm.xlu0 %1037, %v786_v29   ;;  %473 = vperm.xlu1 %1038, %v797_v30  }
  0x27   :  { %478 = vperm.xlu0 %1037, %v798_v31   ;;  %483 = vperm.xlu1 %1038, %v799_v32  }
  0x2b   :  { %488 = vperm.xlu0 %1037, %v800_v33   ;;  %493 = vperm.xlu1 %1038, %v801_v34  }
  0x2f   :  { %620 = vperm.xlu0 %1037, %v812_v35   ;;  %625 = vperm.xlu1 %1038, %v813_v36   ;;  %v777_v36 = vld [vmem:[%s1378_s1 + $0x50] sm:$0xff] }
  0x33   :  { %630 = vperm.xlu0 %1037, %v814_v37   ;;  %635 = vperm.xlu1 %1038, %v815_v38   ;;  %v778_v38 = vld [vmem:[%s1378_s1 + $0x58] sm:$0xff] }
  0x37   :  { %640 = vperm.xlu0 %1037, %v816_v39   ;;  %v779_v39 = vld [vmem:[%s1378_s1 + $0x60] sm:$0xff] }
  0x85   :  { %v32_v40 = vpop.permute.xlu0 %31  ;;  %v42_v41 = vpop.permute.xlu1 %41 }
  0x89   :  { %v37_v47 = vpop.permute.xlu0 %36  ;;  %v47_v48 = vpop.permute.xlu1 %46 }
  0x8e   :  { %v52_v58 = vpop.permute.xlu0 %51  ;;  %v180_v11 = vpop.permute.xlu1 %179 }
  0x92   :  { %v185_v14 = vpop.permute.xlu0 %184  ;;  %v190_v19 = vpop.permute.xlu1 %189 }
  0x96   :  { %v195_v22 = vpop.permute.xlu0 %194  ;;  %v200_v27 = vpop.permute.xlu1 %199 }
  0xe0   :  { %v136_v42 = vpop.f32.mrb[0].mxu0  ;;  %v151_v43 = vpop.f32.mrb[0].mxu1 }
  0xe1   :  { %v884_v44 = vpop.f32.mrb[1].mxu0  ;;  %v893_v45 = vpop.f32.mrb[1].mxu1  ;;  %v137_v46 = vadd.f32 %v136_v42, %v32_v40  ;;  %v152_v54 = vadd.f32 %v151_v43, %v47_v48  ;;  %v780_v40 = vld [vmem:[%s1378_s1 + $0x68] sm:$0xff] }
  0xe2   :  { %v327_v43 = vpop.permute.xlu0 %326 }
  0xe3   :  { %1039 = vtanh.f32 %v137_v46  ;;  %v332_v46 = vpop.permute.xlu1 %331 }
  0xe4   :  { %v141_v49 = vpop.f32.mrb[2].mxu0  ;;  %v156_v50 = vpop.f32.mrb[2].mxu1 }
  0xe5   :  { %v142_v51 = vadd.f32 %v141_v49, %v37_v47  ;;  %v887_v52 = vpop.f32.mrb[3].mxu0  ;;  %v896_v53 = vpop.f32.mrb[3].mxu1  ;;  %v157_v59 = vadd.f32 %v156_v50, %v52_v58 }
  0xe7   :  { %1041 = vtanh.f32 %v142_v51  ;;  %v337_v51 = vpop.permute.xlu0 %336 }
  0xe8   :  { %v146_v55 = vpop.f32.mrb[4].mxu0  ;;  %1043 = vtanh.f32 %v152_v54  ;;  %v342_v54 = vpop.permute.xlu1 %341 }
  0xe9   :  { %v147_v56 = vadd.f32 %v146_v55, %v42_v41  ;;  %v890_v57 = vpop.f32.mrb[5].mxu0  ;;  %v781_v41 = vld [vmem:[%s1378_s1 + $0x70] sm:$0xff] }
  0xeb   :  { %1045 = vtanh.f32 %v147_v56 }
  0xec   :  { %1047 = vtanh.f32 %v157_v59  ;;  %v347_v59 = vpop.permute.xlu0 %346 }
  0xed   :  { %v1040_v60 = vpop.eup %1039 }
  0xf1   :  { %v1042_v61 = vpop.eup %1041 }
  0xf2   :  { %v1004_v62 = vpack.c.bf16 %v1042_v61, %v1040_v60  ;;  %v1044_v63 = vpop.eup %1043 }
  0xf4   :  { %1005 = vmatpush3.bf16.msra.mxu1 %v1004_v62 }
  0xf5   :  { %v1046_v1 = vpop.eup %1045  ;;  %1006 = vmatprep.subr.bf16.mxu1 %v1079_v0 }
  0xf6   :  { %v1007_v2 = vpack.c.bf16 %v1044_v63, %v1046_v1  ;;  %v1048_v4 = vpop.eup %1047 }
  0xf8   :  { %1008 = vmatpush3.bf16.msra.mxu1 %v1007_v2 }
  0xf9   :  { %905 = vmatprep.subr.mxu1 %v1081_v6 }
  0xfc   :  { %906 = vmatpush3.msra.mxu1 %v1048_v4 }
  0xfd   :  { %908 = vmatmul.mubr.msk.f32.vlgmr.msra.gmra.mrb[4].mxu1 %vm54_vm1, %v762_v3  ;;  %1015 = vmatprep.subr.bf16.mxu1 %v1079_v0 }
  0xfe   :  { %910 = vmatprep.mubr.msk.f32.mxu1 %vm1080_vm0, %v1081_v6 }
 0x101   :  { %911 = vmatmul.mubr.msk.f32.gmra.mrb[6].mxu1 %vm54_vm1, %v763_v5  ;;  %v792_v5 = vld [vmem:[%s1378_s1 + $0x78] sm:$0xff] }
 0x102   :  { %913 = vmatprep.mubr.msk.f32.mxu1 %vm1080_vm0, %v1081_v6 }
 0x105   :  { %914 = vmatmul.mubr.msk.f32.gmra.mrb[8].mxu1 %vm54_vm1, %v764_v7 }
 0x106   :  { %916 = vmatprep.mubr.msk.f32.mxu1 %vm1080_vm0, %v1081_v6 }
 0x109   :  { %917 = vmatmul.mubr.msk.f32.gmra.mrb[10].mxu1 %vm54_vm1, %v765_v8  ;;  %v793_v8 = vld [vmem:[%s1378_s1 + $0x80] sm:$0xff] }
 0x10a   :  { %919 = vmatprep.mubr.msk.f32.mxu1 %vm1080_vm0, %v1081_v6 }
 0x10d   :  { %920 = vmatmul.mubr.msk.f32.gmra.mrb[12].mxu1 %vm54_vm1, %v766_v9  ;;  %v794_v9 = vld [vmem:[%s1378_s1 + $0x88] sm:$0xff] }
 0x10e   :  { %957 = vmatprep.mubr.msk.f32.mxu1 %vm1080_vm0, %v1081_v6 }
 0x1d0   :  { %v283_v10 = vpop.f32.mrb[4].mxu1 }
 0x1d1   :  { %v909_v12 = vpop.f32.mrb[5].mxu1  ;;  %v284_v13 = vadd.f32 %v283_v10, %v180_v11  ;;  %v795_v10 = vld [vmem:[%s1378_s1 + $0x90] sm:$0xff]  ;;  %v796_v11 = vld [vmem:[%s1378_s1 + $0x98] sm:$0xff] }
 0x1d3   :  { %1049 = vtanh.f32 %v284_v13  ;;  %v474_v13 = vpop.permute.xlu1 %473 }
 0x1d4   :  { %v288_v15 = vpop.f32.mrb[6].mxu1 }
 0x1d5   :  { %v289_v16 = vadd.f32 %v288_v15, %v185_v14  ;;  %v912_v17 = vpop.f32.mrb[7].mxu1 }
 0x1d7   :  { %1051 = vtanh.f32 %v289_v16  ;;  %v479_v16 = vpop.permute.xlu0 %478 }
 0x1d8   :  { %v293_v18 = vpop.f32.mrb[8].mxu1 }
 0x1d9   :  { %v915_v20 = vpop.f32.mrb[9].mxu1  ;;  %v294_v21 = vadd.f32 %v293_v18, %v190_v19 }
 0x1db   :  { %1053 = vtanh.f32 %v294_v21  ;;  %v484_v21 = vpop.permute.xlu1 %483 }
 0x1dc   :  { %v298_v23 = vpop.f32.mrb[10].mxu1 }
 0x1dd   :  { %v299_v24 = vadd.f32 %v298_v23, %v195_v22  ;;  %v918_v25 = vpop.f32.mrb[11].mxu1  ;;  %v1050_v26 = vpop.eup %1049 }
 0x1df   :  { %1055 = vtanh.f32 %v299_v24  ;;  %v489_v24 = vpop.permute.xlu0 %488 }
 0x1e0   :  { %v303_v28 = vpop.f32.mrb[12].mxu1 }
 0x1e1   :  { %v1052_v29 = vpop.eup %1051  ;;  %v304_v30 = vadd.f32 %v303_v28, %v200_v27  ;;  %v921_v31 = vpop.f32.mrb[13].mxu1 }
 0x1e2   :  { %v1010_v32 = vpack.c.bf16 %v1052_v29, %v1050_v26  ;;  %v494_v29 = vpop.permute.xlu1 %493 }
 0x1e3   :  { %1057 = vtanh.f32 %v304_v30 }
 0x1e4   :  { %1011 = vmatpush3.bf16.msra.mxu0 %v1010_v32 }
 0x1e5   :  { %1012 = vmatprep.subr.bf16.mxu0 %v1079_v0  ;;  %v1054_v33 = vpop.eup %1053 }
 0x1e9   :  { %v1056_v34 = vpop.eup %1055 }
 0x1ea   :  { %v1013_v35 = vpack.c.bf16 %v1056_v34, %v1054_v33 }
 0x1ec   :  { %1014 = vmatpush3.bf16.msra.mxu0 %v1013_v35 }
 0x1ed   :  { %930 = vmatprep.subr.mxu0 %v1081_v6  ;;  %v1058_v37 = vpop.eup %1057 }
 0x1f0   :  { %931 = vmatpush3.msra.mxu0 %v1058_v37 }
 0x1f1   :  { %933 = vmatmul.mubr.msk.f32.vlgmr.msra.gmra.mrb[6].mxu0 %vm54_vm1, %v777_v36  ;;  %1021 = vmatprep.subr.bf16.mxu0 %v1079_v0 }
 0x1f2   :  { %935 = vmatprep.mubr.msk.f32.mxu0 %vm1080_vm0, %v1081_v6 }
 0x1f5   :  { %936 = vmatmul.mubr.msk.f32.gmra.mrb[8].mxu0 %vm54_vm1, %v778_v38  ;;  %v807_v38 = vld [vmem:[%s1378_s1 + $0xa0] sm:$0xff] }
 0x1f6   :  { %938 = vmatprep.mubr.msk.f32.mxu0 %vm1080_vm0, %v1081_v6 }
 0x1f9   :  { %939 = vmatmul.mubr.msk.f32.gmra.mrb[10].mxu0 %vm54_vm1, %v779_v39 }
 0x1fa   :  { %941 = vmatprep.mubr.msk.f32.mxu0 %vm1080_vm0, %v1081_v6 }
 0x1fd   :  { %942 = vmatmul.mubr.msk.f32.gmra.mrb[12].mxu0 %vm54_vm1, %v780_v40  ;;  %v809_v40 = vld [vmem:[%s1378_s1 + $0xb0] sm:$0xff] }
 0x1fe   :  { %944 = vmatprep.mubr.msk.f32.mxu0 %vm1080_vm0, %v1081_v6 }
 0x201   :  { %945 = vmatmul.mubr.msk.f32.gmra.mrb[14].mxu0 %vm54_vm1, %v781_v41  ;;  %v810_v41 = vld [vmem:[%s1378_s1 + $0xb8] sm:$0xff] }
 0x202   :  { %982 = vmatprep.mubr.msk.f32.mxu0 %vm1080_vm0, %v1081_v6 }
 0x2c4   :  { %v430_v42 = vpop.f32.mrb[6].mxu0 }
 0x2c5   :  { %v934_v44 = vpop.f32.mrb[7].mxu0  ;;  %v431_v45 = vadd.f32 %v430_v42, %v327_v43  ;;  %v811_v42 = vld [vmem:[%s1378_s1 + $0xc0] sm:$0xff]  ;;  %v621_v43 = vpop.permute.xlu0 %620 }
 0x2c7   :  { %1059 = vtanh.f32 %v431_v45 }
 0x2c8   :  { %v435_v47 = vpop.f32.mrb[8].mxu0 }
 0x2c9   :  { %v436_v48 = vadd.f32 %v435_v47, %v332_v46  ;;  %v937_v49 = vpop.f32.mrb[9].mxu0  ;;  %v626_v47 = vpop.permute.xlu1 %625 }
 0x2cb   :  { %1061 = vtanh.f32 %v436_v48 }
 0x2cc   :  { %v440_v50 = vpop.f32.mrb[10].mxu0 }
 0x2cd   :  { %v940_v52 = vpop.f32.mrb[11].mxu0  ;;  %v441_v53 = vadd.f32 %v440_v50, %v337_v51 }
 0x2cf   :  { %1063 = vtanh.f32 %v441_v53 }
 0x2d0   :  { %v445_v55 = vpop.f32.mrb[12].mxu0 }
 0x2d1   :  { %v446_v56 = vadd.f32 %v445_v55, %v342_v54  ;;  %v943_v57 = vpop.f32.mrb[13].mxu0  ;;  %v1060_v58 = vpop.eup %1059 }
 0x2d2   :  { %v636_v54 = vpop.permute.xlu1 %635 }
 0x2d3   :  { %1065 = vtanh.f32 %v446_v56 }
 0x2d4   :  { %v450_v60 = vpop.f32.mrb[14].mxu0 }
 0x2d5   :  { %v1062_v61 = vpop.eup %1061  ;;  %v451_v62 = vadd.f32 %v450_v60, %v347_v59  ;;  %v946_v63 = vpop.f32.mrb[15].mxu0 }
 0x2d6   :  { %v1016_v1 = vpack.c.bf16 %v1062_v61, %v1060_v58 }
 0x2d7   :  { %1067 = vtanh.f32 %v451_v62 }
 0x2d8   :  { %1017 = vmatpush3.bf16.msra.mxu1 %v1016_v1 }
 0x2d9   :  { %1018 = vmatprep.subr.bf16.mxu1 %v1079_v0  ;;  %v1064_v2 = vpop.eup %1063 }
 0x2dd   :  { %v1066_v3 = vpop.eup %1065 }
 0x2de   :  { %v1019_v4 = vpack.c.bf16 %v1066_v3, %v1064_v2 }
 0x2e0   :  { %1020 = vmatpush3.bf16.msra.mxu1 %v1019_v4 }
 0x2e1   :  { %955 = vmatprep.subr.mxu1 %v1081_v6  ;;  %v1068_v7 = vpop.eup %1067 }
 0x2e4   :  { %956 = vmatpush3.msra.mxu1 %v1068_v7 }
 0x2e5   :  { %958 = vmatmul.mubr.msk.f32.vlgmr.msra.gmra.mrb[14].mxu1 %vm54_vm1, %v792_v5 }
 0x2e6   :  { %960 = vmatprep.mubr.msk.f32.mxu1 %vm1080_vm0, %v1081_v6 }
 0x2e9   :  { %961 = vmatmul.mubr.msk.f32.gmra.mrb[16].mxu1 %vm54_vm1, %v793_v8 }
 0x2ea   :  { %963 = vmatprep.mubr.msk.f32.mxu1 %vm1080_vm0, %v1081_v6 }
 0x2ed   :  { %964 = vmatmul.mubr.msk.f32.gmra.mrb[18].mxu1 %vm54_vm1, %v794_v9 }
 0x2ee   :  { %966 = vmatprep.mubr.msk.f32.mxu1 %vm1080_vm0, %v1081_v6 }
 0x2f1   :  { %967 = vmatmul.mubr.msk.f32.gmra.mrb[20].mxu1 %vm54_vm1, %v795_v10 }
 0x2f2   :  { %969 = vmatprep.mubr.msk.f32.mxu1 %vm1080_vm0, %v1081_v6 }
 0x2f5   :  { %970 = vmatmul.mubr.msk.f32.gmra.mrb[22].mxu1 %vm54_vm1, %v796_v11 }
 0x3b8   :  { %v577_v12 = vpop.f32.mrb[14].mxu1 }
 0x3b9   :  { %v959_v14 = vpop.f32.mrb[15].mxu1  ;;  %v578_v15 = vadd.f32 %v577_v12, %v474_v13 }
 0x3bb   :  { %1069 = vtanh.f32 %v578_v15 }
 0x3bc   :  { %v582_v17 = vpop.f32.mrb[16].mxu1 }
 0x3bd   :  { %v583_v18 = vadd.f32 %v582_v17, %v479_v16  ;;  %v962_v19 = vpop.f32.mrb[17].mxu1 }
 0x3bf   :  { %1071 = vtanh.f32 %v583_v18 }
 0x3c0   :  { %v587_v20 = vpop.f32.mrb[18].mxu1 }
 0x3c1   :  { %v965_v22 = vpop.f32.mrb[19].mxu1  ;;  %v588_v23 = vadd.f32 %v587_v20, %v484_v21 }
 0x3c3   :  { %1073 = vtanh.f32 %v588_v23 }
 0x3c4   :  { %v592_v25 = vpop.f32.mrb[20].mxu1 }
 0x3c5   :  { %v593_v26 = vadd.f32 %v592_v25, %v489_v24  ;;  %v968_v27 = vpop.f32.mrb[21].mxu1  ;;  %v1070_v28 = vpop.eup %1069 }
 0x3c7   :  { %1075 = vtanh.f32 %v593_v26 }
 0x3c8   :  { %v597_v30 = vpop.f32.mrb[22].mxu1 }
 0x3c9   :  { %v1072_v31 = vpop.eup %1071  ;;  %v598_v32 = vadd.f32 %v597_v30, %v494_v29  ;;  %v971_v33 = vpop.f32.mrb[23].mxu1 }
 0x3ca   :  { %v1022_v34 = vpack.c.bf16 %v1072_v31, %v1070_v28 }
 0x3cb   :  { %1077 = vtanh.f32 %v598_v32 }
 0x3cc   :  { %1023 = vmatpush3.bf16.msra.mxu0 %v1022_v34 }
 0x3cd   :  { %1024 = vmatprep.subr.bf16.mxu0 %v1079_v0  ;;  %v1074_v35 = vpop.eup %1073  ;;  %v808_v0 = vld [vmem:[%s1378_s1 + $0xa8] sm:$0xff] }
 0x3d1   :  { %v1076_v36 = vpop.eup %1075 }
 0x3d2   :  { %v1025_v37 = vpack.c.bf16 %v1076_v36, %v1074_v35 }
 0x3d4   :  { %1026 = vmatpush3.bf16.msra.mxu0 %v1025_v37 }
 0x3d5   :  { %980 = vmatprep.subr.mxu0 %v1081_v6  ;;  %v1078_v39 = vpop.eup %1077 }
 0x3d8   :  { %981 = vmatpush3.msra.mxu0 %v1078_v39 }
 0x3d9   :  { %983 = vmatmul.mubr.msk.f32.vlgmr.msra.gmra.mrb[16].mxu0 %vm54_vm1, %v807_v38 }
 0x3da   :  { %985 = vmatprep.mubr.msk.f32.mxu0 %vm1080_vm0, %v1081_v6 }
 0x3dd   :  { %986 = vmatmul.mubr.msk.f32.gmra.mrb[18].mxu0 %vm54_vm1, %v808_v0 }
 0x3de   :  { %988 = vmatprep.mubr.msk.f32.mxu0 %vm1080_vm0, %v1081_v6 }
 0x3e1   :  { %989 = vmatmul.mubr.msk.f32.gmra.mrb[20].mxu0 %vm54_vm1, %v809_v40 }
 0x3e2   :  { %991 = vmatprep.mubr.msk.f32.mxu0 %vm1080_vm0, %v1081_v6 }
 0x3e5   :  { %992 = vmatmul.mubr.msk.f32.gmra.mrb[22].mxu0 %vm54_vm1, %v810_v41 }
 0x3e6   :  { %994 = vmatprep.mubr.msk.f32.mxu0 %vm1080_vm0, %v1081_v6  ;;  %v631_v6 = vpop.permute.xlu0 %630 }
 0x3e9   :  { %995 = vmatmul.mubr.msk.f32.gmra.mrb[24].mxu0 %vm54_vm1, %v811_v42 }
 0x3ea   :  { %v641_v58 = vpop.permute.xlu0 %640 }
 0x4ac   :  { %v724_v44 = vpop.f32.mrb[16].mxu0 }
 0x4ad   :  { %v725_v45 = vadd.f32 %v724_v44, %v621_v43  ;;  %v984_v46 = vpop.f32.mrb[17].mxu0 }
 0x4af   :  { %748 = vst [vmem:[%s1379_s3] sm:$0xff] %v725_v45 }
 0x4b0   :  { %v729_v48 = vpop.f32.mrb[18].mxu0 }
 0x4b1   :  { %v730_v49 = vadd.f32 %v729_v48, %v626_v47  ;;  %v987_v50 = vpop.f32.mrb[19].mxu0 }
 0x4b3   :  { %749 = vst [vmem:[%s1379_s3 + $0x8] sm:$0xff] %v730_v49 }
 0x4b4   :  { %v734_v51 = vpop.f32.mrb[20].mxu0 }
 0x4b5   :  { %v735_v52 = vadd.f32 %v734_v51, %v631_v6  ;;  %v990_v53 = vpop.f32.mrb[21].mxu0 }
 0x4b7   :  { %750 = vst [vmem:[%s1379_s3 + $0x10] sm:$0xff] %v735_v52 }
 0x4b8   :  { %v739_v55 = vpop.f32.mrb[22].mxu0 }
 0x4b9   :  { %v740_v56 = vadd.f32 %v739_v55, %v636_v54  ;;  %v993_v57 = vpop.f32.mrb[23].mxu0 }
 0x4bb   :  { %751 = vst [vmem:[%s1379_s3 + $0x18] sm:$0xff] %v740_v56 }
 0x4bc   :  { %v744_v59 = vpop.f32.mrb[24].mxu0 }
 0x4bd   :  { %v745_v60 = vadd.f32 %v744_v59, %v641_v58  ;;  %v996_v61 = vpop.f32.mrb[25].mxu0 }
 0x4bf   :  { %752 = vst [vmem:[%s1379_s3 + $0x20] sm:$0xff] %v745_v60 }

</bundles_post_ra>
